<compile_context>
chip_gen: v6e
topology: v6e:2x2x1
jax: 0.10.0
libtpu: 0.0.40
codegen_flags: <defaults>
</compile_context>

<pallas_src>
import jax
import jax.numpy as jnp
import numpy as np
from jax.experimental import pallas as pl
from jax.experimental.pallas import tpu as pltpu

HIDDEN = 128   # hidden_size from the module
PROJ = 64      # inner projection dim of nn.Linear(hidden_size, 64)


def self_attention_kernel(x_ref, w1_ref, b1_ref, w2_ref, o_ref):
    tb, s, hid = x_ref.shape
    proj = w1_ref.shape[1]

    x = x_ref[...]                                    # (TB, S, H)
    x2d = x.reshape(tb * s, hid)                      # merge batch/seq (layout-free for S % 8 == 0)

    # Linear(H, 64) + ReLU  (MXU matmul, VPU max)
    h = jnp.dot(x2d, w1_ref[...], preferred_element_type=jnp.float32)   # (TB*S, 64)
    h = jnp.maximum(h + b1_ref[...], 0.0)

    # Linear(64, 1): contract the 64 projection lanes against the w2 row.
    # Kept lane-dense as (TB, S) (sequence on lanes) for the softmax.
    # b2 is omitted: softmax over the sequence is shift-invariant.
    energy = jnp.sum((h * w2_ref[...]).reshape(tb, s, proj), axis=-1)    # (TB, S)

    # softmax over the sequence axis (lane reductions)
    m = jnp.max(energy, axis=-1, keepdims=True)                          # (TB, 1)
    p = jnp.exp(energy - m)                                              # (TB, S)
    weights = p * pl.reciprocal(jnp.sum(p, axis=-1, keepdims=True), approx=False)

    # Weighted sum over the sequence: batched (1,S)@(S,H) contraction on the MXU.
    out = jnp.einsum("bqs,bsh->bqh", weights[:, None, :], x,
                     preferred_element_type=jnp.float32)                 # (TB, 1, H)
    o_ref[...] = out.reshape(tb, hid).astype(o_ref.dtype)


def self_attention(encoder_outputs, w1, b1, w2, b2=None, *, block_b=8):
    """encoder_outputs: (B, S, H) float32. Returns (B, H).

    block_b: batch rows per grid step (rounded up to a multiple of 8 so the output
    block is sublane-dense). Sizing guide: block_b*S >= 256 rows fills the v6e/v7x
    MXU, >= 128 suffices on v5e; keep cdiv(B, block_b) >= 2 so both v7x TensorCores
    get work on the "parallel" grid axis. b2 is accepted for API parity but unused
    (softmax shift invariance).
    """
    B, S, H = encoder_outputs.shape
    P = w1.shape[1]

    tb = max(8, ((block_b + 7) // 8) * 8)
    num_blocks = pl.cdiv(B, tb)
    b_pad = num_blocks * tb
    if b_pad != B:
        # Zero padding is safe: padded rows produce finite outputs that are sliced off.
        encoder_outputs = jnp.pad(encoder_outputs, ((0, b_pad - B), (0, 0), (0, 0)))

    b1_2d = b1.reshape(1, P)
    w2_2d = w2.reshape(1, P)   # (64, 1) weight stored as a lane-dense (1, 64) row

    # TODO(synk): for very long sequences, add a second ("arbitrary") seq grid axis with
    # an online-softmax accumulator instead of loading the whole (TB, S, H) slab at once.
    out = pl.pallas_call(
        self_attention_kernel,
        out_shape=jax.ShapeDtypeStruct((b_pad, H), encoder_outputs.dtype),
        grid_spec=pltpu.PrefetchScalarGridSpec(
            num_scalar_prefetch=0,
            grid=(num_blocks,),
            in_specs=[
                pl.BlockSpec((tb, S, H), lambda b: (b, 0, 0)),
                pl.BlockSpec((H, P), lambda b: (0, 0)),
                pl.BlockSpec((1, P), lambda b: (0, 0)),
                pl.BlockSpec((1, P), lambda b: (0, 0)),
            ],
            out_specs=pl.BlockSpec((tb, H), lambda b: (b, 0)),
        ),
        compiler_params=pltpu.CompilerParams(
            dimension_semantics=("parallel",),
            vmem_limit_bytes=32 * 1024 * 1024,
        ),
    )(encoder_outputs, w1, b1_2d, w2_2d)
    return out[:B]


def reference(encoder_outputs, w1, b1, w2, b2):
    # Pure-JAX reference mirroring the PyTorch forward (b2 included).
    h = jnp.maximum(encoder_outputs @ w1 + b1, 0.0)          # (B, S, 64)
    energy = (h @ w2 + b2).squeeze(-1)                       # (B, S)
    weights = jax.nn.softmax(energy, axis=1)                 # softmax over seq
    return jnp.sum(encoder_outputs * weights[..., None], axis=1)


if __name__ == "__main__":
    key = jax.random.PRNGKey(0)
    k_x, k_w1, k_b1, k_w2, k_b2 = jax.random.split(key, 5)

    B, S, H = 16, 8, HIDDEN
    x = jax.random.normal(k_x, (B, S, H), dtype=jnp.float32)

    # Deterministic PyTorch-style uniform(-1/sqrt(fan_in), 1/sqrt(fan_in)) init
    lim1 = 1.0 / np.sqrt(H)
    lim2 = 1.0 / np.sqrt(PROJ)
    w1 = jax.random.uniform(k_w1, (H, PROJ), jnp.float32, -lim1, lim1)
    b1 = jax.random.uniform(k_b1, (PROJ,), jnp.float32, -lim1, lim1)
    w2 = jax.random.uniform(k_w2, (PROJ, 1), jnp.float32, -lim2, lim2)
    b2 = jax.random.uniform(k_b2, (1,), jnp.float32, -lim2, lim2)

    out = self_attention(x, w1, b1, w2, b2, block_b=8)   # grid=(2,), TB*S = 64 rows/step
    out = jax.block_until_ready(out)

    ref = jax.block_until_ready(reference(x, w1, b1, w2, b2))
    assert out.shape == (B, H)
    assert np.allclose(np.asarray(out), np.asarray(ref), rtol=1e-5, atol=2e-5)

    print("KERNEL_OK")
</pallas_src>

<mosaic_0001>
module attributes {stable_mosaic.version = 11 : i64} {
  func.func @self_attention_kernel(%arg0: i32, %arg1: memref<8x8x128xf32, #tpu.memory_space<vmem>>, %arg2: memref<128x64xf32, #tpu.memory_space<vmem>>, %arg3: memref<1x64xf32, #tpu.memory_space<vmem>>, %arg4: memref<1x64xf32, #tpu.memory_space<vmem>>, %arg5: memref<8x128xf32, #tpu.memory_space<vmem>>) attributes {dimension_semantics = [#tpu.dimension_semantics<parallel>], iteration_bounds = array<i64: 2>, scalar_prefetch = 0 : i64, scratch_operands = 0 : i64, tpu.core_type = #tpu.core_type<tc>, window_params = [{transform_indices = @transform_0, window_bounds = array<i64: 8, 8, 128>}, {pipeline_mode = #tpu.pipeline_mode<synchronous>, transform_indices = @transform_1, window_bounds = array<i64: 128, 64>}, {pipeline_mode = #tpu.pipeline_mode<synchronous>, transform_indices = @transform_2, window_bounds = array<i64: 1, 64>}, {pipeline_mode = #tpu.pipeline_mode<synchronous>, transform_indices = @transform_3, window_bounds = array<i64: 1, 64>}, {transform_indices = @transform_4, window_bounds = array<i64: 8, 128>}]} {
    %c0 = arith.constant 0 : index
    %c0_0 = arith.constant 0 : index
    %c0_1 = arith.constant 0 : index
    %0 = vector.load %arg1[%c0, %c0_0, %c0_1] : memref<8x8x128xf32, #tpu.memory_space<vmem>>, vector<8x8x128xf32>
    %1 = vector.shape_cast %0 : vector<8x8x128xf32> to vector<64x128xf32>
    %c0_2 = arith.constant 0 : index
    %c0_3 = arith.constant 0 : index
    %2 = vector.load %arg2[%c0_2, %c0_3] : memref<128x64xf32, #tpu.memory_space<vmem>>, vector<128x64xf32>
    %cst = arith.constant dense<0.000000e+00> : vector<64x64xf32>
    %3 = tpu.matmul %1, %2, %cst {dimension_numbers = #tpu.dot_dimension_numbers<[1], [0], [0], [1], [0, 0, 1, 1], [], []>} : vector<64x128xf32>, vector<128x64xf32>, vector<64x64xf32> -> vector<64x64xf32>
    %c0_4 = arith.constant 0 : index
    %c0_5 = arith.constant 0 : index
    %4 = vector.load %arg3[%c0_4, %c0_5] : memref<1x64xf32, #tpu.memory_space<vmem>>, vector<1x64xf32>
    %5 = vector.broadcast %4 : vector<1x64xf32> to vector<64x64xf32>
    %6 = arith.addf %3, %5 : vector<64x64xf32>
    %cst_6 = arith.constant 0.000000e+00 : f32
    %7 = vector.broadcast %cst_6 : f32 to vector<64x64xf32>
    %8 = arith.maximumf %6, %7 : vector<64x64xf32>
    %c0_7 = arith.constant 0 : index
    %c0_8 = arith.constant 0 : index
    %9 = vector.load %arg4[%c0_7, %c0_8] : memref<1x64xf32, #tpu.memory_space<vmem>>, vector<1x64xf32>
    %10 = vector.broadcast %9 : vector<1x64xf32> to vector<64x64xf32>
    %11 = arith.mulf %8, %10 : vector<64x64xf32>
    %12 = vector.shape_cast %11 : vector<64x64xf32> to vector<8x8x64xf32>
    %cst_9 = arith.constant dense<0.000000e+00> : vector<8x8xf32>
    %13 = vector.multi_reduction <add>, %12, %cst_9 [2] : vector<8x8x64xf32> to vector<8x8xf32>
    %cst_10 = arith.constant dense<0xFF800000> : vector<8xf32>
    %14 = vector.multi_reduction <maximumf>, %13, %cst_10 [1] : vector<8x8xf32> to vector<8xf32>
    %15 = vector.shape_cast %14 : vector<8xf32> to vector<8x1xf32>
    %16 = vector.broadcast %15 : vector<8x1xf32> to vector<8x8xf32>
    %17 = arith.subf %13, %16 : vector<8x8xf32>
    %18 = math.exp %17 : vector<8x8xf32>
    %cst_11 = arith.constant dense<0.000000e+00> : vector<8xf32>
    %19 = vector.multi_reduction <add>, %18, %cst_11 [1] : vector<8x8xf32> to vector<8xf32>
    %20 = vector.shape_cast %19 : vector<8xf32> to vector<8x1xf32>
    %21 = tpu.reciprocal %20 : vector<8x1xf32> -> vector<8x1xf32>
    %22 = vector.broadcast %21 : vector<8x1xf32> to vector<8x8xf32>
    %23 = arith.mulf %18, %22 : vector<8x8xf32>
    %24 = vector.shape_cast %23 : vector<8x8xf32> to vector<8x1x8xf32>
    "tpu.trace_start"() <{level = 10 : i32, message = "bqs,bsh->bqh"}> : () -> ()
    %cst_12 = arith.constant dense<0.000000e+00> : vector<8x1x128xf32>
    %25 = tpu.matmul %24, %0, %cst_12 {dimension_numbers = #tpu.dot_dimension_numbers<[2], [1], [1], [2], [0, 0, 0, 1, 1, 2], [0], [0]>} : vector<8x1x8xf32>, vector<8x8x128xf32>, vector<8x1x128xf32> -> vector<8x1x128xf32>
    "tpu.trace_stop"() : () -> ()
    %26 = vector.shape_cast %25 : vector<8x1x128xf32> to vector<8x128xf32>
    %c0_13 = arith.constant 0 : index
    %c0_14 = arith.constant 0 : index
    %27 = vector.load %arg5[%c0_13, %c0_14] : memref<8x128xf32, #tpu.memory_space<vmem>>, vector<8x128xf32>
    tpu.vector_store %arg5[%c0_13, %c0_14], %26 {strides = array<i32>} : memref<8x128xf32, #tpu.memory_space<vmem>>, vector<8x128xf32>,
    return
  }
  func.func @transform_0(%arg0: i32) -> (i32, i32, i32) {
    %c0_i32 = arith.constant 0 : i32
    %c0_i32_0 = arith.constant 0 : i32
    %c0_i32_1 = arith.constant 0 : i32
    return %arg0, %c0_i32, %c0_i32_0 : i32, i32, i32
  }
  func.func @transform_1(%arg0: i32) -> (i32, i32) {
    %c0_i32 = arith.constant 0 : i32
    %c0_i32_0 = arith.constant 0 : i32
    %c0_i32_1 = arith.constant 0 : i32
    return %c0_i32, %c0_i32_0 : i32, i32
  }
  func.func @transform_2(%arg0: i32) -> (i32, i32) {
    %c0_i32 = arith.constant 0 : i32
    %c0_i32_0 = arith.constant 0 : i32
    %c0_i32_1 = arith.constant 0 : i32
    return %c0_i32, %c0_i32_0 : i32, i32
  }
  func.func @transform_3(%arg0: i32) -> (i32, i32) {
    %c0_i32 = arith.constant 0 : i32
    %c0_i32_0 = arith.constant 0 : i32
    %c0_i32_1 = arith.constant 0 : i32
    return %c0_i32, %c0_i32_0 : i32, i32
  }
  func.func @transform_4(%arg0: i32) -> (i32, i32) {
    %c0_i32 = arith.constant 0 : i32
    %c0_i32_0 = arith.constant 0 : i32
    return %arg0, %c0_i32 : i32, i32
  }
}

</mosaic_0001>

<bundles_post_ra>
// kernel: tpu_custom_call.1
= control target key start
LH: loop header
LB: loop body
LE: loop exit
PB: predicated region body
PF: predicated region fallthrough
CT: control target
= control target key end

     0   :  { %9 = vsyncpa [#allocation3], 0  ;;  %s1988_s0 = inlined_call_operand.vmem [shape: f32[16,8,128], index: 0, kind: input, shape index: {}]   ;;  %s1989_s1 = inlined_call_operand.vmem [shape: f32[128,64], index: 1, kind: input, shape index: {}]   ;;  %s1990_s2 = inlined_call_operand.vmem [shape: f32[1,64], index: 2, kind: input, shape index: {}]   ;;  %s1991_s3 = inlined_call_operand.vmem [shape: f32[1,64], index: 3, kind: input, shape index: {}]   ;;  %s1992_s4 = inlined_call_operand.hbm [shape: f32[16,128], index: 4, kind: output, shape index: {}]  }
   0x1   :  { %11 = vsyncpa [#allocation3 + $0x1], 0  ;;  %s1668_s15 = smov 0   ;;  %s1670_s16 = smov 0  }
   0x2   :  { %s1672_s17 = smov 0   ;;  %s1674_s18 = smov 0  }
   0x3 LB: > { %s1689_s19 = sadd.s32 4294967295, %s1637_s18   ;;  %s1370_s20 = sadd.s32 4294967294, %s1637_s18   ;;  %s1637_s18 = sphi %s1674_s18, %s1998_s18   ;;  %s1633_s17 = sphi %s1672_s17, %s1997_s17   ;;  %s1629_s16 = sphi %s1670_s16, %s1996_s16   ;;  %s1625_s15 = sphi %s1668_s15, %s1995_s15  }
   0x4   : > { %s1693_s21 = sadd.s32 1, %s1637_s18   ;;  %s113_s22 = sadd.s32 1, %s1633_s17 }
   0x5   : > { %s110_s23 = ssub.s32 %s1637_s18, %s1693_s21  ;;  %p123_p0 = scmp.ne.s32.totalorder %s1633_s17, %s1629_s16 }
   0x6   : > { %p111_p1 = scmp.eq.s32.totalorder %s110_s23, 0  ;;  %p124_p2 = scmp.eq.s32.totalorder %s1689_s19, 1 }
   0x7   : > { %p129_p3 = scmp.ne.s32.totalorder %s1629_s16, %s1625_s15  ;;  %p130_p4 = scmp.eq.s32.totalorder %s1370_s20, 1 }
   0x8   : > { %s1704_s24 = scalar_select %p111_p1, %s1633_s17, %s113_s22  }
   0x9   : > { %p1706_p5 = por %p124_p2, %p123_p0  ;;  %p1710_p6 = por %p130_p4, %p129_p3 }
   0xa   : > { %p1373_p7 = scmp.ge.s32.totalorder %s1637_s18, 1  ;;  %p166_p8 = scmp.lt.s32.totalorder %s1637_s18, 3 }
   0xc   : > { %p167_p9 = pnand %p1373_p7, %p166_p8 }
   0xd   : > { %s1375_s5 = sshll.u32 (!%p167_p9), %s1689_s19, 3  ;;  %s1642_s27 = smov (!%p167_p9), [#allocation2]  }
   0xe   : > { %170 = sbr.rel (%p167_p9) target bundleno = 1239 (0x4d7), region = 36  ;;  %p193_p10 = scmp.lt.s32.totalorder (!%p167_p9), %s1375_s5, 15 }
   0xf   : > { %s1581_s28 = sshll.u32 (!%p167_p9), %s1642_s27, 4  ;;  %s1582_s28 = int_to_ptr.vmem [resolvable:$false] %s1581_s28 }
  0x10   : > { %s1583_s29 = scalar_lea.vmem (!%p167_p9), %s1582_s28, 256 }
  0x13   : > { %v221_v0 = vld [vmem:[%s1989_s1 + $0x78] sm:$0xff]  ;;  %v220_v1 = vld [vmem:[%s1989_s1 + $0x70] sm:$0xff]  ;;  %v219_v2 = vld [vmem:[%s1989_s1 + $0x68] sm:$0xff]  ;;  %s2000_s5 = smov (!%p193_p10, %s1375_s5), 15  ;;  %vm357_vm0 = vcmask 523264   ;;  %vm424_vm1 = vcmask 1041409  }
  0x14   : > { %1431 = vmatprep.subr.mxu0 %v221_v0  ;;  %v218_v3 = vld [vmem:[%s1989_s1 + $0x60] sm:$0xff]  ;;  %s1376_s10 = sshll.u32 %s2000_s5, 3  ;;  %v217_v4 = vld [vmem:[%s1989_s1 + $0x58] sm:$0xff]  ;;  %v216_v6 = vld [vmem:[%s1989_s1 + $0x50] sm:$0xff]  ;;  %vm426_vm2 = vcmask 1042434   ;;  %vm428_vm3 = vcmask 1043459  }
  0x15   : > { %1432 = vmatpush3.msra.mxu0 %v221_v0  ;;  %s1735_s20 = scalar_lea.vmem %s1988_s0, %s1376_s10  ;;  %v215_v7 = vld [vmem:[%s1989_s1 + $0x48] sm:$0xff]  ;;  %v214_v8 = vld [vmem:[%s1989_s1 + $0x40] sm:$0xff]  ;;  %v213_v9 = vld [vmem:[%s1989_s1 + $0x38] sm:$0xff]  ;;  %vm430_vm4 = vcmask 1044484   ;;  %vm432_vm5 = vcmask 1045509   ;;  %vm434_vm6 = vcmask 1046534  }
  0x16   : > { %1433 = vmatprep.subr.mxu0 %v220_v1  ;;  %v1738_v5 = vld [vmem:[%s1735_s20] sm:$0xff]  ;;  %v212_v10 = vld [vmem:[%s1989_s1 + $0x30] sm:$0xff]  ;;  %v211_v11 = vld [vmem:[%s1989_s1 + $0x28] sm:$0xff]  ;;  %vm436_vm7 = vcmask 1047559   ;;  %vm439_vm8 = vcmask 64512   ;;  %vm1641_vm9 = vmmov 0  }
  0x17   : > { %1434 = vmatpush3.msra.mxu0 %v220_v1  ;;  %1463 = vmatprep.mubr.f32.mxu0 %v1738_v5  ;;  %v210_v12 = vld [vmem:[%s1989_s1 + $0x20] sm:$0xff]  ;;  %v209_v13 = vld [vmem:[%s1989_s1 + $0x18] sm:$0xff]  ;;  %v208_v14 = vld [vmem:[%s1989_s1 + $0x10] sm:$0xff]  ;;  %s1388_s10 = sshll.u32 %s1689_s19, 7 }
  0x18   : > { %1435 = vmatprep.subr.mxu0 %v219_v2  ;;  %v207_v15 = vld [vmem:[%s1989_s1 + $0x8] sm:$0xff]  ;;  %v206_v16 = vld [vmem:[%s1989_s1] sm:$0xff]  ;;  %v1778_v18 = vld [vmem:[%s1735_s20 + $0x10] sm:$0xff]  ;;  %s1952_s22 = scalar_lea.hbm %s1992_s4, %s1388_s10 }
  0x19   : > { %1436 = vmatpush3.msra.mxu0 %v219_v2  ;;  %v1775_v17 = vld [vmem:[%s1735_s20 + $0x8] sm:$0xff]  ;;  %v1783_v19 = vld [vmem:[%s1735_s20 + $0x18] sm:$0xff]  ;;  %v1786_v20 = vld [vmem:[%s1735_s20 + $0x20] sm:$0xff]  ;;  %v390_v2 = vlaneseq }
  0x1a   : > { %1437 = vmatprep.subr.mxu0 %v218_v3  ;;  %v1791_v21 = vld [vmem:[%s1735_s20 + $0x28] sm:$0xff]  ;;  %v1794_v22 = vld [vmem:[%s1735_s20 + $0x30] sm:$0xff]  ;;  %v1799_v23 = vld [vmem:[%s1735_s20 + $0x38] sm:$0xff]  ;;  %s189_s20 = sand.u32 1, %s1629_s16  }
  0x1b   : > { %1438 = vmatpush3.msra.mxu0 %v218_v3  ;;  %v1377_v24 = vld [vmem:[%s1990_s2] ss:$0 sm:$0xff]  ;;  %v391_v3 = vand.u32 127, %v390_v2  ;;  %s1374_s9 = sshll.u32 %s189_s20, 3  ;;  %s1298_s19 = scalar_lea.sflag [#allocation3], %s189_s20 }
  0x1c   : > { %1439 = vmatprep.subr.mxu0 %v217_v4  ;;  %v1378_v28 = vld [vmem:[%s1991_s3] ss:$0 sm:$0xff]  ;;  %s191_s11 = scalar_lea.vmem [#allocation2], %s1374_s9 }
  0x1d   : > { %1440 = vmatpush3.msra.mxu0 %v217_v4  ;;  %v1816_v4 = vshrl.u32 %v390_v2, 7  ;;  %s1311_s12 = sshll.u32 %s191_s11, 4  ;;  %s1312_s12 = int_to_ptr.vmem [resolvable:$true] %s1311_s12 }
  0x1e   : > { %1441 = vmatprep.subr.mxu0 %v216_v6  ;;  %s1577_s23 = scalar_lea.vmem %s1312_s12, 128  ;;  %p1584_p0 = scmp.lt.s32.totalorder %s1312_s12, %s1582_s28 }
  0x1f   : > { %1442 = vmatpush3.msra.mxu0 %v216_v6  ;;  %p1578_p11 = scmp.ne.s32.totalorder %s1312_s12, %s1577_s23  ;;  %p1585_p1 = scmp.lt.s32.totalorder %s1583_s29, %s1577_s23 }
  0x20   : > { %1443 = vmatprep.subr.mxu0 %v215_v7 }
  0x21   : > { %1444 = vmatpush3.msra.mxu0 %v215_v7  ;;  %v1819_v7 = vsub.s32 %v391_v3, %v1816_v4  ;;  %p1579_p12 = pnand %p1578_p11, %p1706_p5  ;;  %p1586_p2 = por %p1585_p1, %p1584_p0 }
  0x22   : > { %1445 = vmatprep.subr.mxu0 %v214_v8 }
  0x23   : > { %1446 = vmatpush3.msra.mxu0 %v214_v8  ;;  %p1580_p13 = pneg %p1579_p12 }
  0x24   : > { %1447 = vmatprep.subr.mxu0 %v213_v9 }
  0x25   : > { %1448 = vmatpush3.msra.mxu0 %v213_v9  ;;  %p1587_p3 = pnand %p1586_p2, %p1580_p13 }
  0x26   : > { %1449 = vmatprep.subr.mxu0 %v212_v10 }
  0x27   : > { %1450 = vmatpush3.msra.mxu0 %v212_v10 }
  0x28   : > { %1451 = vmatprep.subr.mxu0 %v211_v11 }
  0x29   : > { %1452 = vmatpush3.msra.mxu0 %v211_v11 }
  0x2a   : > { %1453 = vmatprep.subr.mxu0 %v210_v12 }
  0x2b   : > { %1454 = vmatpush3.msra.mxu0 %v210_v12 }
  0x2c   : > { %1455 = vmatprep.subr.mxu0 %v209_v13 }
  0x2d   : > { %1456 = vmatpush3.msra.mxu0 %v209_v13 }
  0x2e   : > { %1457 = vmatprep.subr.mxu0 %v208_v14 }
  0x2f   : > { %1458 = vmatpush3.msra.mxu0 %v208_v14 }
  0x30   : > { %1459 = vmatprep.subr.mxu0 %v207_v15 }
  0x31   : > { %1460 = vmatpush3.msra.mxu0 %v207_v15 }
  0x32   : > { %1461 = vmatprep.subr.mxu0 %v206_v16 }
  0x33   : > { %1462 = vmatpush3.msra.mxu0 %v206_v16 }
  0x34   : > { %1464 = vmatmul.mubr.f32.vlgmr.msra.gmra.mxu0 %v1775_v17 }
  0x35   : > { %1466 = vmatprep.mubr.f32.mxu0 %v1778_v18 }
  0x38   : > { %1467 = vmatmul.mubr.f32.gmra.mxu0 %v1783_v19 }
  0x39   : > { %1469 = vmatprep.mubr.f32.mxu0 %v1786_v20 }
  0x3c   : > { %1470 = vmatmul.mubr.f32.gmra.mxu0 %v1791_v21 }
  0x3d   : > { %1472 = vmatprep.mubr.f32.mxu0 %v1794_v22 }
  0x40   : > { %1473 = vmatmul.mubr.f32.gmra.mxu0 %v1799_v23 }
  0xf4   : > { %v1465_v25 = vpop.f32.mrf.mxu0 }
  0xf5   : > { %v301_v26 = vadd.f32 %v1465_v25, %v1377_v24 }
  0xf6   : > { %v295_v27 = vpop.f32.mrf.mxu0 }
  0xf7   : > { %v335_v29 = vmax.f32 %v301_v26, 0.0  ;;  %v296_v30 = vadd.f32 %v1377_v24, %v295_v27 }
  0xf8   : > { %v1468_v31 = vpop.f32.mrf.mxu0 }
  0xf9   : > { %v334_v32 = vmax.f32 %v296_v30, 0.0  ;;  %v311_v33 = vadd.f32 %v1468_v31, %v1377_v24  ;;  %v350_v34 = vmul.f32 %v1378_v28, %v335_v29 }
  0xfa   : > { %v305_v35 = vpop.f32.mrf.mxu0 }
  0xfb   : > { %v337_v36 = vmax.f32 %v311_v33, 0.0  ;;  %v306_v37 = vadd.f32 %v1377_v24, %v305_v35  ;;  %v361_v38 = vsel %vm357_vm0, %v350_v34, 0.0  ;;  %v349_v39 = vmul.f32 %v1378_v28, %v334_v32 }
  0xfc   : > { %362 = vadd.xlane.f32.xlu0 %v361_v38  ;;  %v1471_v40 = vpop.f32.mrf.mxu0  ;;  %v1639_v38 = vmov 0  }
  0xfd   : > { %v336_v41 = vmax.f32 %v306_v37, 0.0  ;;  %v321_v42 = vadd.f32 %v1471_v40, %v1377_v24  ;;  %v352_v43 = vmul.f32 %v1378_v28, %v337_v36  ;;  %v358_v45 = vsel %vm357_vm0, %v349_v39, 0.0  ;;  %1558 = vset.pattern.permute.xlu0 %v1639_v38  ;;  %1557 = vset.pattern.permute.xlu1 %v1639_v38 }
  0xfe   : > { %v315_v44 = vpop.f32.mrf.mxu0  ;;  %v446_v39 = vsub.s32 0, %v1816_v4  ;;  %v450_v40 = vsub.s32 1, %v1816_v4 }
  0xff   : > { %v339_v46 = vmax.f32 %v321_v42, 0.0  ;;  %v316_v47 = vadd.f32 %v1377_v24, %v315_v44  ;;  %v367_v48 = vsel %vm357_vm0, %v352_v43, 0.0  ;;  %v351_v49 = vmul.f32 %v1378_v28, %v336_v41 }
 0x100   : > { %368 = vadd.xlane.f32.xlu1 %v367_v48  ;;  %v1474_v50 = vpop.f32.mrf.mxu0  ;;  %359 = vadd.xlane.f32.xlu0 %v358_v45  ;;  %v454_v41 = vsub.s32 2, %v1816_v4  ;;  %v458_v42 = vsub.s32 3, %v1816_v4 }
 0x101   : > { %v338_v51 = vmax.f32 %v316_v47, 0.0  ;;  %v331_v52 = vadd.f32 %v1474_v50, %v1377_v24  ;;  %v364_v54 = vsel %vm357_vm0, %v351_v49, 0.0  ;;  %v354_v58 = vmul.f32 %v1378_v28, %v339_v46 }
 0x102   : > { %v325_v53 = vpop.f32.mrf.mxu0  ;;  %v462_v47 = vsub.s32 4, %v1816_v4 }
 0x103   : > { %v341_v55 = vmax.f32 %v331_v52, 0.0  ;;  %v326_v56 = vadd.f32 %v1377_v24, %v325_v53  ;;  %v353_v57 = vmul.f32 %v1378_v28, %v338_v51  ;;  %v373_v61 = vsel %vm357_vm0, %v354_v58, 0.0 }
 0x104   : > { %365 = vadd.xlane.f32.xlu1 %v364_v54  ;;  %v466_v54 = vsub.s32 5, %v1816_v4  ;;  %v470_v58 = vsub.s32 6, %v1816_v4 }
 0x105   : > { %v340_v59 = vmax.f32 %v326_v56, 0.0  ;;  %v370_v60 = vsel %vm357_vm0, %v353_v57, 0.0  ;;  %v356_v63 = vmul.f32 %v1378_v28, %v341_v55 }
 0x106   : > { %371 = vadd.xlane.f32.xlu0 %v370_v60 }
 0x107   : > { %v355_v62 = vmul.f32 %v1378_v28, %v340_v59  ;;  %v379_v1 = vsel %vm357_vm0, %v356_v63, 0.0 }
 0x108   : > { %374 = vadd.xlane.f32.xlu1 %v373_v61 }
 0x109   : > { %v376_v0 = vsel %vm357_vm0, %v355_v62, 0.0  ;;  %v474_v62 = vsub.s32 7, %v1816_v4 }
 0x10a   : > { %377 = vadd.xlane.f32.xlu0 %v376_v0 }
 0x10c   : > { %380 = vadd.xlane.f32.xlu1 %v379_v1 }
 0x185   : > { %v363_v6 = vpop.xlane.xlu0 %362 }
 0x186   : > { %v399_v11 = vrot.slane %v363_v6, %v1819_v7 }
 0x189   : > { %v369_v8 = vpop.xlane.xlu1 %368  ;;  %v360_v9 = vpop.xlane.xlu0 %359 }
 0x18a   : > { %v395_v10 = vrot.slane %v360_v9, %v1819_v7  ;;  %v407_v14 = vrot.slane %v369_v8, %v1819_v7 }
 0x18c   : > { %v425_v15 = vsel %vm424_vm1, %v399_v11, %v395_v10 }
 0x18d   : > { %v366_v12 = vpop.xlane.xlu1 %365 }
 0x18e   : > { %v403_v13 = vrot.slane %v366_v12, %v1819_v7 }
 0x18f   : > { %v372_v16 = vpop.xlane.xlu0 %371 }
 0x190   : > { %v427_v24 = vsel %vm426_vm2, %v403_v13, %v425_v15  ;;  %v411_v25 = vrot.slane %v372_v16, %v1819_v7 }
 0x191   : > { %v429_v26 = vsel %vm428_vm3, %v407_v14, %v427_v24  ;;  %v375_v27 = vpop.xlane.xlu1 %374 }
 0x192   : > { %v431_v28 = vsel %vm430_vm4, %v411_v25, %v429_v26  ;;  %v415_v29 = vrot.slane %v375_v27, %v1819_v7 }
 0x193   : > { %v378_v30 = vpop.xlane.xlu0 %377 }
 0x194   : > { %v419_v31 = vrot.slane %v378_v30, %v1819_v7  ;;  %v433_v32 = vsel %vm432_vm5, %v415_v29, %v431_v28 }
 0x195   : > { %v381_v33 = vpop.xlane.xlu1 %380 }
 0x196   : > { %v423_v34 = vrot.slane %v381_v33, %v1819_v7  ;;  %v435_v35 = vsel %vm434_vm6, %v419_v31, %v433_v32 }
 0x198   : > { %v437_v36 = vsel %vm436_vm7, %v423_v34, %v435_v35 }
 0x199   : > { %v440_v37 = vsel %vm439_vm8, %v437_v36, -inf }
 0x19a   : > { %441 = vmax.xlane.f32.xlu0 %v440_v37 }
 0x223   : > { %v442_v43 = vpop.xlane.xlu0 %441 }
 0x224   : > { %v447_v44 = vrot.slane %v442_v43, %v446_v39  ;;  %v451_v45 = vrot.slane %v442_v43, %v450_v40  ;;  %v455_v46 = vrot.slane %v442_v43, %v454_v41  ;;  %v459_v48 = vrot.slane %v442_v43, %v458_v42 }
 0x225   : > { %v463_v55 = vrot.slane %v442_v43, %v462_v47  ;;  %v467_v59 = vrot.slane %v442_v43, %v466_v54  ;;  %v471_v63 = vrot.slane %v442_v43, %v470_v58  ;;  %v475_v2 = vrot.slane %v442_v43, %v474_v62 }
 0x226   : > { %v484_v49 = vsub.f32 %v360_v9, %v447_v44  ;;  %v485_v50 = vsub.f32 %v363_v6, %v451_v45  ;;  %v486_v51 = vsub.f32 %v366_v12, %v455_v46  ;;  %v487_v56 = vsub.f32 %v369_v8, %v459_v48 }
 0x227   : > { %v488_v60 = vsub.f32 %v372_v16, %v463_v55  ;;  %v489_v0 = vsub.f32 %v375_v27, %v467_v59  ;;  %v490_v3 = vsub.f32 %v378_v30, %v471_v63  ;;  %v491_v10 = vsub.f32 %v381_v33, %v475_v2 }
 0x228   : > { %v492_v52 = vmul.f32 1.442695, %v484_v49  ;;  %v494_v53 = vmul.f32 1.442695, %v485_v50  ;;  %v496_v57 = vmul.f32 1.442695, %v486_v51 }
 0x229   : > { %v498_v61 = vmul.f32 1.442695, %v487_v56  ;;  %v500_v1 = vmul.f32 1.442695, %v488_v60  ;;  %v502_v6 = vmul.f32 1.442695, %v489_v0 }
 0x22a   : > { %1559 = vpow2.f32 %v492_v52  ;;  %v504_v11 = vmul.f32 1.442695, %v490_v3  ;;  %v506_v13 = vmul.f32 1.442695, %v491_v10  ;;  %v1640_v56 = vmov 0.0  }
 0x22b   : > { %1561 = vpow2.f32 %v494_v53  ;;  %1475 = vmatprep.subr.mxu1 %v1640_v56  ;;  %1477 = vmatprep.mubr.msk.f32.mxu1 %vm1641_vm9, %v1640_v56 }
 0x22c   : > { %1563 = vpow2.f32 %v496_v57  ;;  %1476 = vmatpush3.msra.mxu1 %v1738_v5 }
 0x22d   : > { %1565 = vpow2.f32 %v498_v61  ;;  %1480 = vmatprep.subr.mxu1 %v1640_v56 }
 0x22e   : > { %1567 = vpow2.f32 %v500_v1 }
 0x22f   : > { %1569 = vpow2.f32 %v502_v6 }
 0x230   : > { %1571 = vpow2.f32 %v504_v11 }
 0x231   : > { %1573 = vpow2.f32 %v506_v13 }
 0x237   : > { %v1560_v8 = vpop.eup %1559 }
 0x238   : > { %v1562_v9 = vpop.eup %1561  ;;  %517 = vperm.xlu1 %1557, %v1560_v8  }
 0x239   : > { %520 = vperm.xlu0 %1558, %v1562_v9   ;;  %v1564_v12 = vpop.eup %1563 }
 0x23a   : > { %v1566_v14 = vpop.eup %1565 }
 0x23b   : > { %v1568_v15 = vpop.eup %1567 }
 0x23c   : > { %523 = vperm.xlu1 %1557, %v1564_v12   ;;  %v1570_v16 = vpop.eup %1569 }
 0x23d   : > { %v1572_v24 = vpop.eup %1571 }
 0x23e   : > { %v1574_v25 = vpop.eup %1573 }
 0x240   : > { %526 = vperm.xlu1 %1557, %v1566_v14  }
 0x244   : > { %529 = vperm.xlu1 %1557, %v1568_v15  }
 0x248   : > { %532 = vperm.xlu1 %1557, %v1570_v16  }
 0x24c   : > { %535 = vperm.xlu1 %1557, %v1572_v24  }
 0x250   : > { %538 = vperm.xlu1 %1557, %v1574_v25  }
 0x2b3   : > { %v518_v26 = vpop.permute.xlu1 %517 }
 0x2b4   : > { %v521_v30 = vpop.permute.xlu0 %520  ;;  %v543_v33 = vrot.slane %v518_v26, %v1819_v7 }
 0x2b5   : > { %v547_v32 = vrot.slane %v521_v30, %v1819_v7 }
 0x2b7   : > { %v524_v27 = vpop.permute.xlu1 %523  ;;  %v572_v38 = vsel %vm424_vm1, %v547_v32, %v543_v33 }
 0x2b8   : > { %v551_v34 = vrot.slane %v524_v27, %v1819_v7 }
 0x2ba   : > { %v573_v44 = vsel %vm426_vm2, %v551_v34, %v572_v38 }
 0x2bb   : > { %v527_v28 = vpop.permute.xlu1 %526 }
 0x2bc   : > { %v555_v35 = vrot.slane %v527_v28, %v1819_v7 }
 0x2be   : > { %v574_v46 = vsel %vm428_vm3, %v555_v35, %v573_v44 }
 0x2bf   : > { %v530_v29 = vpop.permute.xlu1 %529 }
 0x2c0   : > { %v559_v36 = vrot.slane %v530_v29, %v1819_v7 }
 0x2c2   : > { %v575_v48 = vsel %vm430_vm4, %v559_v36, %v574_v46 }
 0x2c3   : > { %v533_v31 = vpop.permute.xlu1 %532 }
 0x2c4   : > { %v563_v43 = vrot.slane %v533_v31, %v1819_v7 }
 0x2c6   : > { %v576_v50 = vsel %vm432_vm5, %v563_v43, %v575_v48 }
 0x2c7   : > { %v536_v37 = vpop.permute.xlu1 %535 }
 0x2c8   : > { %v567_v45 = vrot.slane %v536_v37, %v1819_v7 }
 0x2ca   : > { %v577_v52 = vsel %vm434_vm6, %v567_v45, %v576_v50 }
 0x2cb   : > { %v539_v49 = vpop.permute.xlu1 %538 }
 0x2cc   : > { %v571_v51 = vrot.slane %v539_v49, %v1819_v7 }
 0x2ce   : > { %v578_v53 = vsel %vm436_vm7, %v571_v51, %v577_v52 }
 0x2cf   : > { %v580_v55 = vsel %vm439_vm8, %v578_v53, 0.0 }
 0x2d0   : > { %581 = vadd.xlane.f32.xlu1 %v580_v55 }
 0x359   : > { %v582_v57 = vpop.xlane.xlu1 %581 }
 0x35a   : > { %1575 = vrcp.f32 %v582_v57 }
 0x367   : > { %v1576_v59 = vpop.eup %1575 }
 0x368   : > { %v588_v60 = vrot.slane %v1576_v59, %v446_v39  ;;  %v592_v63 = vrot.slane %v1576_v59, %v450_v40  ;;  %v596_v5 = vrot.slane %v1576_v59, %v454_v41  ;;  %v600_v2 = vrot.slane %v1576_v59, %v458_v42 }
 0x369   : > { %v604_v3 = vrot.slane %v1576_v59, %v462_v47  ;;  %v608_v6 = vrot.slane %v1576_v59, %v466_v54  ;;  %v612_v41 = vrot.slane %v1576_v59, %v470_v58  ;;  %v616_v42 = vrot.slane %v1576_v59, %v474_v62 }
 0x36a   : > { %v625_v61 = vmul.f32 %v1560_v8, %v588_v60  ;;  %v626_v0 = vmul.f32 %v1562_v9, %v592_v63  ;;  %v627_v1 = vmul.f32 %v1564_v12, %v596_v5  ;;  %v628_v39 = vmul.f32 %v1566_v14, %v600_v2 }
 0x36b   : > { %v629_v40 = vmul.f32 %v1568_v15, %v604_v3  ;;  %v630_v8 = vmul.f32 %v1570_v16, %v608_v6  ;;  %v631_v9 = vmul.f32 %v1572_v24, %v612_v41  ;;  %v632_v10 = vmul.f32 %v1574_v25, %v616_v42 }
 0x36c   : > { %635 = vperm.xlu0 %1558, %v625_v61  }
 0x370   : > { %715 = vperm.xlu0 %1558, %v626_v0  }
 0x374   : > { %795 = vperm.xlu0 %1558, %v627_v1  }
 0x378   : > { %875 = vperm.xlu0 %1558, %v628_v39  }
 0x37c   : > { %955 = vperm.xlu0 %1558, %v629_v40  }
 0x380   : > { %1035 = vperm.xlu0 %1558, %v630_v8  }
 0x384   : > { %1115 = vperm.xlu0 %1558, %v631_v9  }
 0x388   : > { %1195 = vperm.xlu0 %1558, %v632_v10  }
 0x3e7   : > { %v636_v11 = vpop.permute.xlu0 %635 }
 0x3e8   : > { %v640_v47 = vrot.slane %v636_v11, %v1819_v7 }
 0x3ea   : > { %1478 = vmatmul.mubr.msk.f32.vlgmr.msra.gmra.mxu1 %vm439_vm8, %v640_v47 }
 0x3eb   : > { %1481 = vmatpush3.msra.mxu1 %v1775_v17  ;;  %v716_v54 = vpop.permute.xlu0 %715  ;;  %1482 = vmatprep.mubr.msk.f32.mxu1 %vm1641_vm9, %v1640_v56 }
 0x3ec   : > { %v720_v58 = vrot.slane %v716_v54, %v1819_v7  ;;  %1485 = vmatprep.subr.mxu1 %v1640_v56 }
 0x3ee   : > { %1483 = vmatmul.mubr.msk.f32.vlgmr.msra.gmra.mxu1 %vm439_vm8, %v720_v58 }
 0x3ef   : > { %1486 = vmatpush3.msra.mxu1 %v1778_v18  ;;  %v796_v4 = vpop.permute.xlu0 %795  ;;  %1487 = vmatprep.mubr.msk.f32.mxu1 %vm1641_vm9, %v1640_v56 }
 0x3f0   : > { %v800_v62 = vrot.slane %v796_v4, %v1819_v7  ;;  %1490 = vmatprep.subr.mxu1 %v1640_v56 }
 0x3f2   : > { %1488 = vmatmul.mubr.msk.f32.vlgmr.msra.gmra.mxu1 %vm439_vm8, %v800_v62 }
 0x3f3   : > { %1491 = vmatpush3.msra.mxu1 %v1783_v19  ;;  %v876_v17 = vpop.permute.xlu0 %875  ;;  %1492 = vmatprep.mubr.msk.f32.mxu1 %vm1641_vm9, %v1640_v56 }
 0x3f4   : > { %v880_v12 = vrot.slane %v876_v17, %v1819_v7  ;;  %1495 = vmatprep.subr.mxu1 %v1640_v56 }
 0x3f6   : > { %1493 = vmatmul.mubr.msk.f32.vlgmr.msra.gmra.mxu1 %vm439_vm8, %v880_v12 }
 0x3f7   : > { %1496 = vmatpush3.msra.mxu1 %v1786_v20  ;;  %v956_v18 = vpop.permute.xlu0 %955  ;;  %1497 = vmatprep.mubr.msk.f32.mxu1 %vm1641_vm9, %v1640_v56 }
 0x3f8   : > { %v960_v13 = vrot.slane %v956_v18, %v1819_v7  ;;  %1500 = vmatprep.subr.mxu1 %v1640_v56 }
 0x3fa   : > { %1498 = vmatmul.mubr.msk.f32.vlgmr.msra.gmra.mxu1 %vm439_vm8, %v960_v13 }
 0x3fb   : > { %1501 = vmatpush3.msra.mxu1 %v1791_v21  ;;  %v1036_v19 = vpop.permute.xlu0 %1035  ;;  %1502 = vmatprep.mubr.msk.f32.mxu1 %vm1641_vm9, %v1640_v56 }
 0x3fc   : > { %v1040_v14 = vrot.slane %v1036_v19, %v1819_v7  ;;  %1505 = vmatprep.subr.mxu1 %v1640_v56 }
 0x3fe   : > { %1503 = vmatmul.mubr.msk.f32.vlgmr.msra.gmra.mxu1 %vm439_vm8, %v1040_v14 }
 0x3ff   : > { %1506 = vmatpush3.msra.mxu1 %v1794_v22  ;;  %v1116_v20 = vpop.permute.xlu0 %1115  ;;  %1507 = vmatprep.mubr.msk.f32.mxu1 %vm1641_vm9, %v1640_v56 }
 0x400   : > { %v1120_v15 = vrot.slane %v1116_v20, %v1819_v7  ;;  %1510 = vmatprep.subr.mxu1 %v1640_v56 }
 0x402   : > { %1508 = vmatmul.mubr.msk.f32.vlgmr.msra.gmra.mxu1 %vm439_vm8, %v1120_v15 }
 0x403   : > { %1511 = vmatpush3.msra.mxu1 %v1799_v23  ;;  %v1196_v21 = vpop.permute.xlu0 %1195  ;;  %1512 = vmatprep.mubr.msk.f32.mxu1 %vm1641_vm9, %v1640_v56 }
 0x404   : > { %v1200_v16 = vrot.slane %v1196_v21, %v1819_v7 }
 0x406   : > { %1513 = vmatmul.mubr.msk.f32.vlgmr.msra.gmra.mxu1 %vm439_vm8, %v1200_v16 }
 0x4aa   : > { %v709_v22 = vpop.f32.mrf.mxu1 }
 0x4ac   : > { %v1479_v24 = vpop.f32.mrf.mxu1 }
 0x4ae   : > { %v789_v25 = vpop.f32.mrf.mxu1 }
 0x4af   : > { %v1281_v33 = vrot.slane %v789_v25, 7 }
 0x4b0   : > { %v1484_v26 = vpop.f32.mrf.mxu1 }
 0x4b1   : > { %v1282_v38 = vsel %vm424_vm1, %v1281_v33, %v709_v22 }
 0x4b2   : > { %v869_v27 = vpop.f32.mrf.mxu1 }
 0x4b3   : > { %v1283_v34 = vrot.slane %v869_v27, 6 }
 0x4b4   : > { %v1489_v28 = vpop.f32.mrf.mxu1 }
 0x4b5   : > { %v1284_v44 = vsel %vm426_vm2, %v1283_v34, %v1282_v38 }
 0x4b6   : > { %v949_v29 = vpop.f32.mrf.mxu1 }
 0x4b7   : > { %v1285_v7 = vrot.slane %v949_v29, 5 }
 0x4b8   : > { %v1494_v30 = vpop.f32.mrf.mxu1 }
 0x4b9   : > { %v1286_v48 = vsel %vm428_vm3, %v1285_v7, %v1284_v44 }
 0x4ba   : > { %v1029_v31 = vpop.f32.mrf.mxu1 }
 0x4bb   : > { %v1287_v36 = vrot.slane %v1029_v31, 4 }
 0x4bc   : > { %v1499_v32 = vpop.f32.mrf.mxu1 }
 0x4bd   : > { %v1288_v49 = vsel %vm430_vm4, %v1287_v36, %v1286_v48 }
 0x4be   : > { %v1109_v23 = vpop.f32.mrf.mxu1 }
 0x4bf   : > { %v1289_v43 = vrot.slane %v1109_v23, 3 }
 0x4c0   : > { %v1504_v35 = vpop.f32.mrf.mxu1 }
 0x4c1   : > { %v1290_v51 = vsel %vm432_vm5, %v1289_v43, %v1288_v49 }
 0x4c2   : > { %v1189_v37 = vpop.f32.mrf.mxu1 }
 0x4c3   : > { %v1291_v45 = vrot.slane %v1189_v37, 2 }
 0x4c4   : > { %v1509_v46 = vpop.f32.mrf.mxu1 }
 0x4c5   : > { %v1292_v53 = vsel %vm434_vm6, %v1291_v45, %v1290_v51 }
 0x4c6   : > { %v1269_v50 = vpop.f32.mrf.mxu1 }
 0x4c7   : > { %v1293_v52 = vrot.slane %v1269_v50, 1 }
 0x4c8   : > { %v1514_v55 = vpop.f32.mrf.mxu1 }
 0x4c9   : > { %v1294_v56 = vsel %vm436_vm7, %v1293_v52, %v1292_v53 }
 0x4ca   : > { %1296 = vst [vmem:[%s191_s11] sm:$0xff] %v1294_v56 }
 0x4cb   : > { %1590 = shalt.err (!%p1587_p3)
}
 0x4cc   : > { %s1591_s30 = scalar_lea.hbm %s1952_s22, 128  ;;  %s1595_s7 = scalar_lea.hbm %s1992_s4, 256 }
 0x4cd   : > { %p1592_p4 = scmp.ne.s32.totalorder %s1952_s22, %s1591_s30  ;;  %p1596_p9 = scmp.lt.s32.totalorder %s1952_s22, %s1992_s4 }
 0x4ce   : > { %p1597_p10 = scmp.lt.s32.totalorder %s1595_s7, %s1591_s30 }
 0x4cf   : > { %p1593_p7 = pnand %p1592_p4, %p1706_p5 }
 0x4d0   : > { %p1598_p11 = por %p1597_p10, %p1596_p9 }
 0x4d1   : > { %p1594_p8 = pneg %p1593_p7 }
 0x4d3   : > { %p1599_p12 = pnand %p1598_p11, %p1594_p8 }
 0x4d5   : > { %1602 = shalt.err (!%p1599_p12)
}
 0x4d6   : > { %1515 = dma.vmem_to_hbm [thread:$0]  (%p1706_p5), %s1312_s12, 128, %s1952_s22, %s1298_s19  }
 0x4d7 PF: > { %p1521_p13 = scmp.ge.s32.totalorder %s1637_s18, 2  ;;  %s1323_s9 = sand.u32 1, %s1625_s15  }
 0x4d8   : > { %s1324_s10 = scalar_lea.sflag [#allocation3], %s1323_s9 }
 0x4d9   : > { %p1518_p0 = pnand %p1521_p13, %p1710_p6 }
 0x4db   : > { %p1519_p1 = pneg %p1518_p0 }
 0x4dd   : > { %1620 = dma.done.wait (%p1519_p1), %s1324_s10, 128  }
 0x4de   : > { %1622 = vsyncadd (%p1519_p1), %s1324_s10, 4294967168  ;;  %p14_p2 = scmp.ge.s32.totalorder %s1693_s21, 4   ;;  %s1995_s15 = smov %s1629_s16 }
 0x4df   : > { %s1996_s16 = smov %s1633_s17  ;;  %s1997_s17 = smov %s1704_s24 }
 0x4e0   : > { %s1998_s18 = smov %s1693_s21  ;;  %16 = sbr.rel (!%p14_p2) target bundleno = 3 (0x3), region = 71 }
 0x4e5   :  { %1329 = vsyncpa [#allocation3], 1 }
 0x4e6   :  { %1331 = vsyncpa [#allocation3 + $0x1], 1 }

</bundles_post_ra>
